<compile_context>
chip_gen: v7x
topology: tpu7x:2x2x1
jax: 0.10.0
libtpu: 0.0.40
codegen_flags: <defaults>
</compile_context>

<pallas_src>
import jax
import jax.numpy as jnp
from jax.experimental import pallas as pl
from jax.experimental.pallas import tpu as pltpu


def _se_kernel(x_ref, f_ref, w1_ref, w2_ref, o_ref):
    x = x_ref[...]                              # (TB, C), input dtype
    f = f_ref[...].astype(jnp.float32)          # (TB, C)

    # fc[0]: Linear(C -> hidden) + ReLU — contraction over C on the MXU.
    h = jnp.dot(x, w1_ref[...], preferred_element_type=jnp.float32)  # (TB, hidden)
    h = jnp.maximum(h, 0.0)

    hidden, C = w2_ref.shape

    # fc[2]: Linear(hidden -> C) + Sigmoid.
    if hidden <= 16:
        # K is tiny (e.g. 4): K broadcast multiply-accumulates on the VPU beat a
        # degenerate, >98%-padded MXU pass and its push/pop round trip.
        w2 = w2_ref[...].astype(jnp.float32)    # (hidden, C)
        z = h[:, 0:1] * w2[0:1, :]
        for k in range(1, hidden):
            z = z + h[:, k : k + 1] * w2[k : k + 1, :]
    else:
        z = jnp.dot(
            h.astype(w2_ref.dtype), w2_ref[...], preferred_element_type=jnp.float32
        )

    y = jax.nn.sigmoid(z)
    o_ref[...] = (f * y + f).astype(o_ref.dtype)


def _pick_block_rows(B, block_rows):
    """Largest valid row tile <= block_rows that divides B and satisfies the
    (8, 128) sublane constraint (multiple of 8, or the full extent B)."""
    block_rows = min(block_rows, B)
    if block_rows == B:
        return B
    br = block_rows - (block_rows % 8)
    while br >= 8 and B % br != 0:
        br -= 8
    return br if br >= 8 else B


def se_layer(x, f, w1, w2, *, block_rows=1024, vmem_limit_bytes=None):
    """x, f: (B, C).  w1: (C, hidden), w2: (hidden, C) — kernel (in, out) layout.

    A PyTorch Linear weight W_pt (out, in) maps to W = W_pt.T, done ONCE at
    init / weight-load time, never per call.
    """
    B, C = x.shape
    Cw, hidden = w1.shape
    assert Cw == C and w2.shape == (hidden, C), "weight shape mismatch"

    tb = _pick_block_rows(B, block_rows)
    grid = (B // tb,)

    row_spec = pl.BlockSpec((tb, C), lambda i: (i, 0))       # tiled over rows
    w1_spec = pl.BlockSpec((C, hidden), lambda i: (0, 0))    # resident across grid
    w2_spec = pl.BlockSpec((hidden, C), lambda i: (0, 0))    # resident across grid

    return pl.pallas_call(
        _se_kernel,
        out_shape=jax.ShapeDtypeStruct((B, C), x.dtype),
        grid=grid,
        in_specs=[row_spec, row_spec, w1_spec, w2_spec],
        out_specs=row_spec,
        compiler_params=pltpu.CompilerParams(
            dimension_semantics=("parallel",),        # megacore / 2-TC sharding on v7x
            vmem_limit_bytes=vmem_limit_bytes,
        ),
    )(x, f, w1, w2)


def se_layer_ref(x, f, w1, w2):
    h = jnp.maximum(x @ w1, 0.0)
    y = jax.nn.sigmoid(h @ w2)
    return f * y + f


if __name__ == "__main__":
    B = 512                 # rows; in a ResNet this is really N*H*W
    channel = 64
    reduction = 16
    hidden = channel // reduction   # 4

    key = jax.random.PRNGKey(0)
    kx, kf, k1, k2 = jax.random.split(key, 4)

    x = jax.random.normal(kx, (B, channel), dtype=jnp.float32)
    f = jax.random.normal(kf, (B, channel), dtype=jnp.float32)

    # Weights already in kernel (in, out) layout — the PyTorch->kernel transpose
    # happens once at init, not inside the per-call wrapper.
    w1 = jax.random.normal(k1, (channel, hidden), dtype=jnp.float32) * 0.1
    w2 = jax.random.normal(k2, (hidden, channel), dtype=jnp.float32) * 0.1

    # block_rows=128 -> grid=(4,): exercises the pipelined multi-step grid path
    # even at this small test size (default is 1024 for production-sized B).
    out = se_layer(x, f, w1, w2, block_rows=128)
    out = jax.block_until_ready(out)

    ref = se_layer_ref(x, f, w1, w2)
    assert jnp.allclose(out, ref, atol=1e-4, rtol=1e-4), "mismatch vs reference"

    print("KERNEL_OK")
</pallas_src>

<mosaic_0001>
module attributes {stable_mosaic.version = 11 : i64} {
  func.func @_se_kernel(%arg0: i32, %arg1: memref<128x64xf32, #tpu.memory_space<vmem>>, %arg2: memref<128x64xf32, #tpu.memory_space<vmem>>, %arg3: memref<64x4xf32, #tpu.memory_space<vmem>>, %arg4: memref<4x64xf32, #tpu.memory_space<vmem>>, %arg5: memref<128x64xf32, #tpu.memory_space<vmem>>) attributes {dimension_semantics = [#tpu.dimension_semantics<parallel>], iteration_bounds = array<i64: 4>, scalar_prefetch = 0 : i64, scratch_operands = 0 : i64, tpu.core_type = #tpu.core_type<tc>, window_params = [{transform_indices = @transform_0, window_bounds = array<i64: 128, 64>}, {transform_indices = @transform_1, window_bounds = array<i64: 128, 64>}, {pipeline_mode = #tpu.pipeline_mode<synchronous>, transform_indices = @transform_2, window_bounds = array<i64: 64, 4>}, {pipeline_mode = #tpu.pipeline_mode<synchronous>, transform_indices = @transform_3, window_bounds = array<i64: 4, 64>}, {transform_indices = @transform_4, window_bounds = array<i64: 128, 64>}]} {
    %c0 = arith.constant 0 : index
    %c0_0 = arith.constant 0 : index
    %0 = vector.load %arg1[%c0, %c0_0] : memref<128x64xf32, #tpu.memory_space<vmem>>, vector<128x64xf32>
    %c0_1 = arith.constant 0 : index
    %c0_2 = arith.constant 0 : index
    %1 = vector.load %arg2[%c0_1, %c0_2] : memref<128x64xf32, #tpu.memory_space<vmem>>, vector<128x64xf32>
    %c0_3 = arith.constant 0 : index
    %c0_4 = arith.constant 0 : index
    %2 = vector.load %arg3[%c0_3, %c0_4] : memref<64x4xf32, #tpu.memory_space<vmem>>, vector<64x4xf32>
    %cst = arith.constant dense<0.000000e+00> : vector<128x4xf32>
    %3 = tpu.matmul %0, %2, %cst {dimension_numbers = #tpu.dot_dimension_numbers<[1], [0], [0], [1], [0, 0, 1, 1], [], []>} : vector<128x64xf32>, vector<64x4xf32>, vector<128x4xf32> -> vector<128x4xf32>
    %cst_5 = arith.constant 0.000000e+00 : f32
    %4 = vector.broadcast %cst_5 : f32 to vector<128x4xf32>
    %5 = arith.maximumf %3, %4 : vector<128x4xf32>
    %c0_6 = arith.constant 0 : index
    %c0_7 = arith.constant 0 : index
    %6 = vector.load %arg4[%c0_6, %c0_7] : memref<4x64xf32, #tpu.memory_space<vmem>>, vector<4x64xf32>
    %7 = vector.extract_strided_slice %5 {offsets = [0, 0], sizes = [128, 1], strides = [1, 1]} : vector<128x4xf32> to vector<128x1xf32>
    %8 = vector.extract_strided_slice %6 {offsets = [0, 0], sizes = [1, 64], strides = [1, 1]} : vector<4x64xf32> to vector<1x64xf32>
    %9 = vector.broadcast %7 : vector<128x1xf32> to vector<128x64xf32>
    %10 = vector.broadcast %8 : vector<1x64xf32> to vector<128x64xf32>
    %11 = arith.mulf %9, %10 : vector<128x64xf32>
    %12 = vector.extract_strided_slice %5 {offsets = [0, 1], sizes = [128, 1], strides = [1, 1]} : vector<128x4xf32> to vector<128x1xf32>
    %13 = vector.extract_strided_slice %6 {offsets = [1, 0], sizes = [1, 64], strides = [1, 1]} : vector<4x64xf32> to vector<1x64xf32>
    %14 = vector.broadcast %12 : vector<128x1xf32> to vector<128x64xf32>
    %15 = vector.broadcast %13 : vector<1x64xf32> to vector<128x64xf32>
    %16 = arith.mulf %14, %15 : vector<128x64xf32>
    %17 = arith.addf %11, %16 : vector<128x64xf32>
    %18 = vector.extract_strided_slice %5 {offsets = [0, 2], sizes = [128, 1], strides = [1, 1]} : vector<128x4xf32> to vector<128x1xf32>
    %19 = vector.extract_strided_slice %6 {offsets = [2, 0], sizes = [1, 64], strides = [1, 1]} : vector<4x64xf32> to vector<1x64xf32>
    %20 = vector.broadcast %18 : vector<128x1xf32> to vector<128x64xf32>
    %21 = vector.broadcast %19 : vector<1x64xf32> to vector<128x64xf32>
    %22 = arith.mulf %20, %21 : vector<128x64xf32>
    %23 = arith.addf %17, %22 : vector<128x64xf32>
    %24 = vector.extract_strided_slice %5 {offsets = [0, 3], sizes = [128, 1], strides = [1, 1]} : vector<128x4xf32> to vector<128x1xf32>
    %25 = vector.extract_strided_slice %6 {offsets = [3, 0], sizes = [1, 64], strides = [1, 1]} : vector<4x64xf32> to vector<1x64xf32>
    %26 = vector.broadcast %24 : vector<128x1xf32> to vector<128x64xf32>
    %27 = vector.broadcast %25 : vector<1x64xf32> to vector<128x64xf32>
    %28 = arith.mulf %26, %27 : vector<128x64xf32>
    %29 = arith.addf %23, %28 : vector<128x64xf32>
    %30 = arith.negf %29 : vector<128x64xf32>
    %31 = math.exp %30 : vector<128x64xf32>
    %cst_8 = arith.constant 1.000000e+00 : f32
    %32 = vector.broadcast %cst_8 : f32 to vector<128x64xf32>
    %33 = arith.addf %32, %31 : vector<128x64xf32>
    %34 = arith.divf %32, %33 : vector<128x64xf32>
    %35 = arith.mulf %1, %34 : vector<128x64xf32>
    %36 = arith.addf %35, %1 : vector<128x64xf32>
    %c0_9 = arith.constant 0 : index
    %c0_10 = arith.constant 0 : index
    %37 = vector.load %arg5[%c0_9, %c0_10] : memref<128x64xf32, #tpu.memory_space<vmem>>, vector<128x64xf32>
    tpu.vector_store %arg5[%c0_9, %c0_10], %36 {strides = array<i32>} : memref<128x64xf32, #tpu.memory_space<vmem>>, vector<128x64xf32>,
    return
  }
  func.func @transform_0(%arg0: i32) -> (i32, i32) {
    %c0_i32 = arith.constant 0 : i32
    %c0_i32_0 = arith.constant 0 : i32
    return %arg0, %c0_i32 : i32, i32
  }
  func.func @transform_1(%arg0: i32) -> (i32, i32) {
    %c0_i32 = arith.constant 0 : i32
    %c0_i32_0 = arith.constant 0 : i32
    return %arg0, %c0_i32 : i32, i32
  }
  func.func @transform_2(%arg0: i32) -> (i32, i32) {
    %c0_i32 = arith.constant 0 : i32
    %c0_i32_0 = arith.constant 0 : i32
    %c0_i32_1 = arith.constant 0 : i32
    return %c0_i32, %c0_i32_0 : i32, i32
  }
  func.func @transform_3(%arg0: i32) -> (i32, i32) {
    %c0_i32 = arith.constant 0 : i32
    %c0_i32_0 = arith.constant 0 : i32
    %c0_i32_1 = arith.constant 0 : i32
    return %c0_i32, %c0_i32_0 : i32, i32
  }
  func.func @transform_4(%arg0: i32) -> (i32, i32) {
    %c0_i32 = arith.constant 0 : i32
    %c0_i32_0 = arith.constant 0 : i32
    return %arg0, %c0_i32 : i32, i32
  }
}

</mosaic_0001>

<bundles_post_ra>
// kernel: tpu_custom_call.1
= control target key start
LH: loop header
LB: loop body
LE: loop exit
PB: predicated region body
PF: predicated region fallthrough
CT: control target
= control target key end

     0   :  { %s1374_s15 = smov 0   ;;  %s1647_s0 = inlined_call_operand.vmem [shape: f32[512,64], index: 0, kind: input, shape index: {}]   ;;  %s1648_s1 = inlined_call_operand.vmem [shape: f32[512,64], index: 1, kind: input, shape index: {}]   ;;  %s1649_s2 = inlined_call_operand.vmem [shape: f32[64,4], index: 2, kind: input, shape index: {}]   ;;  %s1650_s3 = inlined_call_operand.vmem [shape: f32[4,64], index: 3, kind: input, shape index: {}]   ;;  %s1651_s4 = inlined_call_operand.vmem [shape: f32[512,64], index: 4, kind: output, shape index: {}]  }
   0x1 LB: > { %s1086_s16 = sadd.s32 4294967295, %s1343_s15   ;;  %p1090_p0 = scmp.ge.s32.totalorder %s1343_s15, 1  ;;  %s1343_s15 = sphi %s1374_s15, %s14_s15  }
   0x2   : > { %p174_p1 = scmp.lt.s32.totalorder %s1343_s15, 5 }
   0x4   : > { %p175_p2 = pnand %p1090_p0, %p174_p1 }
   0x5   : > { %v255_v0 = vld [vmem:[%s1649_s2] sm:$0xff] (!%p175_p2)  ;;  %v256_v1 = vld [vmem:[%s1649_s2 + $0x8] sm:$0xff] (!%p175_p2)  ;;  %v257_v2 = vld [vmem:[%s1649_s2 + $0x10] sm:$0xff] (!%p175_p2)  ;;  %s1091_s23 = sshll.u32 (!%p175_p2), %s1086_s16, 4  ;;  %vm263_vm0 = vcmask (!%p175_p2), 523264   ;;  %v1345_v28 = vmov (!%p175_p2), 0   ;;  %v554_v63 = vlaneseq (!%p175_p2) }
   0x6   : > { %178 = sbr.rel (%p175_p2) target bundleno = 550 (0x226), region = 36  ;;  %v1195_v3 = vpack.c.bf16 (!%p175_p2), %v256_v1, %v255_v0  ;;  %v258_v4 = vld [vmem:[%s1649_s2 + $0x18] sm:$0xff] (!%p175_p2)  ;;  %p206_p3 = scmp.lt.s32.totalorder (!%p175_p2), %s1091_s23, 63  ;;  %v259_v6 = vld [vmem:[%s1649_s2 + $0x20] sm:$0xff] (!%p175_p2)  ;;  %v260_v7 = vld [vmem:[%s1649_s2 + $0x28] sm:$0xff] (!%p175_p2)  ;;  %1232 = vset.pattern.permute.xlu1 (!%p175_p2), %v1345_v28  ;;  %1231 = vset.pattern.permute.xlu0 (!%p175_p2), %v1345_v28  ;;  %v1346_v39 = vmov (!%p175_p2), 1  }
   0x7   : > { %v1199_v5 = vpack.c.bf16 (!%p175_p2), %v258_v4, %v257_v2  ;;  %v1203_v8 = vpack.c.bf16 (!%p175_p2), %v260_v7, %v259_v6  ;;  %v261_v9 = vld [vmem:[%s1649_s2 + $0x30] sm:$0xff] (!%p175_p2)  ;;  %v262_v10 = vld [vmem:[%s1649_s2 + $0x38] sm:$0xff] (!%p175_p2)  ;;  %v1347_v44 = vmov (!%p175_p2), 2   ;;  %v1348_v49 = vmov (!%p175_p2), 3   ;;  %v473_v7 = vld [vmem:[%s1650_s3] sm:$0xf] (!%p175_p2) }
   0x8   : > { %1196 = vmatprep.subr.bf16.mxu0 (!%p175_p2), %v1195_v3  ;;  %1211 = vmatprep.subr.bf16.mxu1 (!%p175_p2), %v1195_v3  ;;  %v1207_v13 = vpack.c.bf16 (!%p175_p2), %v262_v10, %v261_v9  ;;  %v555_v1 = vshrl.u32 (!%p175_p2), %v554_v63, 7 }
   0x9   : > { %1198 = vmatpush3.bf16.msra.mxu0 (!%p175_p2), %v1195_v3  ;;  %1215 = vmatpush3.bf16.msra.mxu1 (!%p175_p2), %v1195_v3 }
   0xa   : > { %1200 = vmatprep.subr.bf16.mxu0 (!%p175_p2), %v1199_v5  ;;  %1212 = vmatprep.subr.bf16.mxu1 (!%p175_p2), %v1199_v5  ;;  %v640_v4 = vsub.s32 (!%p175_p2), 1, %v555_v1  ;;  %v740_v6 = vsub.s32 (!%p175_p2), 2, %v555_v1 }
   0xc   : > { %v1509_v10 = vrot.slane (!%p175_p2), %v473_v7, %v640_v4 }
   0xd   : > { %s1653_s23 = smov (!%p206_p3, %s1091_s23), 63  ;;  %1202 = vmatpush3.bf16.msra.mxu0 %v1199_v5  ;;  %1216 = vmatpush3.bf16.msra.mxu1 %v1199_v5  ;;  %v556_v5 = vsub.s32 0, %v555_v1 }
   0xe   : > { %s1400_s30 = sshll.u32 %s1653_s23, 3  ;;  %1204 = vmatprep.subr.bf16.mxu0 %v1203_v8  ;;  %1213 = vmatprep.subr.bf16.mxu1 %v1203_v8 }
   0xf   : > { %s1412_s11 = scalar_lea.vmem %s1647_s0, %s1400_s30  ;;  %s1539_s17 = scalar_lea.vmem %s1648_s1, %s1400_s30 }
  0x10   : > { %v223_v11 = vld [vmem:[%s1412_s11] sm:$0xff]  ;;  %v224_v14 = vld [vmem:[%s1412_s11 + $0x8] sm:$0xff]  ;;  %v225_v16 = vld [vmem:[%s1412_s11 + $0x10] sm:$0xff]  ;;  %s1549_s20 = scalar_lea.vmem %s1651_s4, %s1400_s30 }
  0x11   : > { %v231_v12 = vld [vmem:[%s1412_s11 + $0x40] sm:$0xff]  ;;  %1171 = vmatprep.mubr.msk.f32.mxu0 %vm263_vm0, %v223_v11  ;;  %1206 = vmatpush3.bf16.msra.mxu0 %v1203_v8  ;;  %v232_v15 = vld [vmem:[%s1412_s11 + $0x48] sm:$0xff]  ;;  %v233_v17 = vld [vmem:[%s1412_s11 + $0x50] sm:$0xff]  ;;  %v840_v11 = vsub.s32 3, %v555_v1 }
  0x12   : > { %1183 = vmatprep.mubr.msk.f32.mxu1 %vm263_vm0, %v231_v12  ;;  %1217 = vmatpush3.bf16.msra.mxu1 %v1203_v8  ;;  %v226_v18 = vld [vmem:[%s1412_s11 + $0x18] sm:$0xff]  ;;  %v227_v20 = vld [vmem:[%s1412_s11 + $0x20] sm:$0xff]  ;;  %v228_v22 = vld [vmem:[%s1412_s11 + $0x28] sm:$0xff]  ;;  %v1512_v12 = vrot.slane %v473_v7, %v556_v5 }
  0x13   : > { %1208 = vmatprep.subr.bf16.mxu0 %v1207_v13  ;;  %1214 = vmatprep.subr.bf16.mxu1 %v1207_v13  ;;  %v234_v19 = vld [vmem:[%s1412_s11 + $0x58] sm:$0xff]  ;;  %v235_v21 = vld [vmem:[%s1412_s11 + $0x60] sm:$0xff]  ;;  %v236_v23 = vld [vmem:[%s1412_s11 + $0x68] sm:$0xff] }
  0x14   : > { %v229_v24 = vld [vmem:[%s1412_s11 + $0x30] sm:$0xff]  ;;  %v230_v26 = vld [vmem:[%s1412_s11 + $0x38] sm:$0xff]  ;;  %v248_v1 = vld [vmem:[%s1539_s17 + $0x48] sm:$0xff] }
  0x15   : > { %1210 = vmatpush3.bf16.msra.mxu0 %v1207_v13  ;;  %v237_v25 = vld [vmem:[%s1412_s11 + $0x70] sm:$0xff]  ;;  %v238_v27 = vld [vmem:[%s1412_s11 + $0x78] sm:$0xff] }
  0x16   : > { %1218 = vmatpush3.bf16.msra.mxu1 %v1207_v13  ;;  %v1514_v13 = vrot.slane %v473_v7, %v740_v6 }
  0x18   : > { %1172 = vmatmul.mubr.msk.f32.vlgmr.msra.gmra.mrb[0].mxu0 %vm263_vm0, %v224_v14 }
  0x19   : > { %1184 = vmatmul.mubr.msk.f32.vlgmr.msra.gmra.mrb[0].mxu1 %vm263_vm0, %v232_v15  ;;  %1174 = vmatprep.mubr.msk.f32.mxu0 %vm263_vm0, %v225_v16 }
  0x1a   : > { %1186 = vmatprep.mubr.msk.f32.mxu1 %vm263_vm0, %v233_v17 }
  0x1c   : > { %1175 = vmatmul.mubr.msk.f32.gmra.mrb[2].mxu0 %vm263_vm0, %v226_v18 }
  0x1d   : > { %1187 = vmatmul.mubr.msk.f32.gmra.mrb[2].mxu1 %vm263_vm0, %v234_v19  ;;  %1177 = vmatprep.mubr.msk.f32.mxu0 %vm263_vm0, %v227_v20  ;;  %v1519_v19 = vrot.slane %v473_v7, %v840_v11 }
  0x1e   : > { %1189 = vmatprep.mubr.msk.f32.mxu1 %vm263_vm0, %v235_v21 }
  0x20   : > { %1178 = vmatmul.mubr.msk.f32.gmra.mrb[4].mxu0 %vm263_vm0, %v228_v22 }
  0x21   : > { %1190 = vmatmul.mubr.msk.f32.gmra.mrb[4].mxu1 %vm263_vm0, %v236_v23  ;;  %1180 = vmatprep.mubr.msk.f32.mxu0 %vm263_vm0, %v229_v24 }
  0x22   : > { %1192 = vmatprep.mubr.msk.f32.mxu1 %vm263_vm0, %v237_v25 }
  0x24   : > { %1181 = vmatmul.mubr.msk.f32.gmra.mrb[6].mxu0 %vm263_vm0, %v230_v26 }
  0x25   : > { %1193 = vmatmul.mubr.msk.f32.gmra.mrb[6].mxu1 %vm263_vm0, %v238_v27 }
  0xeb   : > { %v1173_v29 = vpop.f32.mrb[0].mxu0 }
  0xec   : > { %v1185_v30 = vpop.f32.mrb[0].mxu1  ;;  %v458_v31 = vmax.f32 %v1173_v29, 0.0  ;;  %v378_v34 = vpop.f32.mrb[1].mxu0 }
  0xed   : > { %v466_v32 = vmax.f32 %v1185_v30, 0.0  ;;  %v418_v33 = vpop.f32.mrb[1].mxu1  ;;  %v457_v51 = vmax.f32 %v378_v34, 0.0 }
  0xee   : > { %481 = vperm.xlu0 %1231, %v458_v31   ;;  %v465_v50 = vmax.f32 %v418_v33, 0.0 }
  0xef   : > { %521 = vperm.xlu1 %1232, %v466_v32   ;;  %v1176_v35 = vpop.f32.mrb[2].mxu0 }
  0xf0   : > { %v1188_v36 = vpop.f32.mrb[2].mxu1  ;;  %v388_v37 = vpop.f32.mrb[3].mxu0  ;;  %v460_v52 = vmax.f32 %v1176_v35, 0.0 }
  0xf1   : > { %v428_v38 = vpop.f32.mrb[3].mxu1  ;;  %v468_v53 = vmax.f32 %v1188_v36, 0.0  ;;  %v459_v54 = vmax.f32 %v388_v37, 0.0 }
  0xf2   : > { %1234 = vset.pattern.permute.xlu0 %v1346_v39  ;;  %v467_v55 = vmax.f32 %v428_v38, 0.0 }
  0xf3   : > { %1233 = vset.pattern.permute.xlu1 %v1346_v39  ;;  %611 = vperm.xlu0 %1234, %v466_v32   ;;  %v1179_v40 = vpop.f32.mrb[4].mxu0 }
  0xf4   : > { %579 = vperm.xlu1 %1233, %v458_v31   ;;  %v1450_v41 = vpop.f32.mrb[4].mxu1  ;;  %v1452_v42 = vpop.f32.mrb[5].mxu0  ;;  %v462_v56 = vmax.f32 %v1179_v40, 0.0 }
  0xf5   : > { %v1454_v43 = vpop.f32.mrb[5].mxu1  ;;  %v470_v57 = vmax.f32 %v1450_v41, 0.0  ;;  %v461_v58 = vmax.f32 %v1452_v42, 0.0 }
  0xf6   : > { %v469_v59 = vmax.f32 %v1454_v43, 0.0 }
  0xf7   : > { %1235 = vset.pattern.permute.xlu0 %v1347_v44  ;;  %v1458_v45 = vpop.f32.mrb[6].mxu0 }
  0xf8   : > { %1236 = vset.pattern.permute.xlu1 %v1347_v44  ;;  %v1460_v46 = vpop.f32.mrb[6].mxu1  ;;  %679 = vperm.xlu0 %1235, %v458_v31   ;;  %v1462_v47 = vpop.f32.mrb[7].mxu0  ;;  %v464_v60 = vmax.f32 %v1458_v45, 0.0 }
  0xf9   : > { %711 = vperm.xlu1 %1236, %v466_v32   ;;  %v1464_v48 = vpop.f32.mrb[7].mxu1  ;;  %v472_v61 = vmax.f32 %v1460_v46, 0.0  ;;  %v463_v62 = vmax.f32 %v1462_v47, 0.0 }
  0xfa   : > { %v471_v0 = vmax.f32 %v1464_v48, 0.0 }
  0xfc   : > { %1238 = vset.pattern.permute.xlu0 %v1348_v49 }
  0xfd   : > { %1237 = vset.pattern.permute.xlu1 %v1348_v49  ;;  %811 = vperm.xlu0 %1238, %v466_v32  }
  0xfe   : > { %779 = vperm.xlu1 %1237, %v458_v31  }
 0x101   : > { %1239 = vset.pattern.permute.xlu0 %v1345_v28 }
 0x102   : > { %1241 = vset.pattern.permute.xlu1 %v1346_v39  ;;  %476 = vperm.xlu0 %1239, %v457_v51  }
 0x103   : > { %607 = vperm.xlu1 %1241, %v465_v50  }
 0x106   : > { %516 = vperm.xlu0 %1239, %v465_v50  }
 0x107   : > { %1242 = vset.pattern.permute.xlu1 %v1347_v44 }
 0x108   : > { %675 = vperm.xlu1 %1242, %v457_v51  }
 0x10a   : > { %1240 = vset.pattern.permute.xlu0 %v1346_v39 }
 0x10b   : > { %575 = vperm.xlu0 %1240, %v457_v51  }
 0x10c   : > { %1245 = vset.pattern.permute.xlu1 %v1348_v49 }
 0x10d   : > { %807 = vperm.xlu1 %1245, %v465_v50  }
 0x10f   : > { %1243 = vset.pattern.permute.xlu0 %v1347_v44 }
 0x110   : > { %707 = vperm.xlu0 %1243, %v465_v50  }
 0x111   : > { %1246 = vset.pattern.permute.xlu1 %v1345_v28 }
 0x112   : > { %491 = vperm.xlu1 %1246, %v460_v52  }
 0x114   : > { %1244 = vset.pattern.permute.xlu0 %v1348_v49 }
 0x115   : > { %775 = vperm.xlu0 %1244, %v457_v51  }
 0x116   : > { %531 = vperm.xlu1 %1246, %v468_v53  }
 0x119   : > { %1247 = vset.pattern.permute.xlu0 %v1346_v39 }
 0x11a   : > { %1248 = vset.pattern.permute.xlu1 %v1347_v44  ;;  %587 = vperm.xlu0 %1247, %v460_v52  }
 0x11b   : > { %687 = vperm.xlu1 %1248, %v460_v52  }
 0x11e   : > { %619 = vperm.xlu0 %1247, %v468_v53  }
 0x11f   : > { %719 = vperm.xlu1 %1248, %v468_v53  }
 0x122   : > { %1249 = vset.pattern.permute.xlu0 %v1348_v49 }
 0x123   : > { %1250 = vset.pattern.permute.xlu1 %v1345_v28  ;;  %787 = vperm.xlu0 %1249, %v460_v52  }
 0x124   : > { %486 = vperm.xlu1 %1250, %v459_v54  }
 0x127   : > { %819 = vperm.xlu0 %1249, %v468_v53  }
 0x128   : > { %1252 = vset.pattern.permute.xlu1 %v1346_v39 }
 0x129   : > { %583 = vperm.xlu1 %1252, %v459_v54  }
 0x12b   : > { %1251 = vset.pattern.permute.xlu0 %v1345_v28 }
 0x12c   : > { %526 = vperm.xlu0 %1251, %v467_v55  }
 0x12d   : > { %615 = vperm.xlu1 %1252, %v467_v55  }
 0x130   : > { %1254 = vset.pattern.permute.xlu0 %v1347_v44 }
 0x131   : > { %1253 = vset.pattern.permute.xlu1 %v1347_v44  ;;  %715 = vperm.xlu0 %1254, %v467_v55  }
 0x132   : > { %683 = vperm.xlu1 %1253, %v459_v54  }
 0x135   : > { %1257 = vset.pattern.permute.xlu0 %v1346_v39 }
 0x136   : > { %1255 = vset.pattern.permute.xlu1 %v1348_v49  ;;  %595 = vperm.xlu0 %1257, %v462_v56  }
 0x137   : > { %783 = vperm.xlu1 %1255, %v459_v54  }
 0x13a   : > { %627 = vperm.xlu0 %1257, %v470_v57  }
 0x13b   : > { %815 = vperm.xlu1 %1255, %v467_v55  }
 0x13e   : > { %1259 = vset.pattern.permute.xlu0 %v1348_v49 }
 0x13f   : > { %1256 = vset.pattern.permute.xlu1 %v1345_v28  ;;  %795 = vperm.xlu0 %1259, %v462_v56  }
 0x140   : > { %501 = vperm.xlu1 %1256, %v462_v56  }
 0x143   : > { %827 = vperm.xlu0 %1259, %v470_v57  }
 0x144   : > { %541 = vperm.xlu1 %1256, %v470_v57  }
 0x147   : > { %1260 = vset.pattern.permute.xlu0 %v1345_v28 }
 0x148   : > { %1258 = vset.pattern.permute.xlu1 %v1347_v44  ;;  %496 = vperm.xlu0 %1260, %v461_v58  }
 0x149   : > { %695 = vperm.xlu1 %1258, %v462_v56  }
 0x14c   : > { %536 = vperm.xlu0 %1260, %v469_v59  }
 0x14d   : > { %727 = vperm.xlu1 %1258, %v470_v57  }
 0x150   : > { %1262 = vset.pattern.permute.xlu0 %v1347_v44 }
 0x151   : > { %1261 = vset.pattern.permute.xlu1 %v1346_v39  ;;  %691 = vperm.xlu0 %1262, %v461_v58  }
 0x152   : > { %591 = vperm.xlu1 %1261, %v461_v58  }
 0x155   : > { %723 = vperm.xlu0 %1262, %v469_v59  }
 0x156   : > { %623 = vperm.xlu1 %1261, %v469_v59  }
 0x159   : > { %1265 = vset.pattern.permute.xlu0 %v1346_v39 }
 0x15a   : > { %1263 = vset.pattern.permute.xlu1 %v1348_v49  ;;  %603 = vperm.xlu0 %1265, %v464_v60  }
 0x15b   : > { %791 = vperm.xlu1 %1263, %v461_v58  }
 0x15e   : > { %635 = vperm.xlu0 %1265, %v472_v61  }
 0x15f   : > { %823 = vperm.xlu1 %1263, %v469_v59  }
 0x162   : > { %1267 = vset.pattern.permute.xlu0 %v1348_v49 }
 0x163   : > { %1264 = vset.pattern.permute.xlu1 %v1345_v28  ;;  %803 = vperm.xlu0 %1267, %v464_v60  }
 0x164   : > { %511 = vperm.xlu1 %1264, %v464_v60  }
 0x167   : > { %1268 = vset.pattern.permute.xlu0 %v1345_v28 }
 0x168   : > { %551 = vperm.xlu1 %1264, %v472_v61   ;;  %506 = vperm.xlu0 %1268, %v463_v62  }
 0x16c   : > { %1266 = vset.pattern.permute.xlu1 %v1347_v44  ;;  %546 = vperm.xlu0 %1268, %v471_v0  }
 0x16d   : > { %703 = vperm.xlu1 %1266, %v464_v60   ;;  %v482_v3 = vpop.permute.xlu0 %481 }
 0x16e   : > { %v522_v2 = vpop.permute.xlu1 %521  ;;  %v559_v14 = vmul.f32 %v1512_v12, %v482_v3 }
 0x16f   : > { %v567_v20 = vmul.f32 %v1512_v12, %v522_v2 }
 0x170   : > { %1270 = vset.pattern.permute.xlu0 %v1347_v44 }
 0x171   : > { %735 = vperm.xlu1 %1266, %v472_v61   ;;  %699 = vperm.xlu0 %1270, %v463_v62  }
 0x172   : > { %v612_v9 = vpop.permute.xlu0 %611 }
 0x173   : > { %v580_v8 = vpop.permute.xlu1 %579  ;;  %v651_v16 = vmul.f32 %v1509_v10, %v612_v9 }
 0x174   : > { %v643_v15 = vmul.f32 %v1509_v10, %v580_v8 }
 0x175   : > { %1269 = vset.pattern.permute.xlu1 %v1346_v39  ;;  %731 = vperm.xlu0 %1270, %v471_v0   ;;  %v667_v24 = vadd.f32 %v651_v16, %v567_v20 }
 0x176   : > { %599 = vperm.xlu1 %1269, %v463_v62   ;;  %v659_v23 = vadd.f32 %v643_v15, %v559_v14 }
 0x177   : > { %v680_v18 = vpop.permute.xlu0 %679 }
 0x178   : > { %v712_v17 = vpop.permute.xlu1 %711  ;;  %v743_v22 = vmul.f32 %v1514_v13, %v680_v18 }
 0x179   : > { %v751_v21 = vmul.f32 %v1514_v13, %v712_v17  ;;  %1272 = vset.pattern.permute.xlu0 %v1348_v49 }
 0x17a   : > { %631 = vperm.xlu1 %1269, %v471_v0   ;;  %835 = vperm.xlu0 %1272, %v472_v61   ;;  %v759_v28 = vadd.f32 %v743_v22, %v659_v23 }
 0x17b   : > { %v767_v27 = vadd.f32 %v751_v21, %v667_v24 }
 0x17c   : > { %v812_v26 = vpop.permute.xlu0 %811 }
 0x17d   : > { %v780_v25 = vpop.permute.xlu1 %779  ;;  %v851_v30 = vmul.f32 %v1519_v19, %v812_v26 }
 0x17e   : > { %v843_v29 = vmul.f32 %v1519_v19, %v780_v25  ;;  %1271 = vset.pattern.permute.xlu1 %v1348_v49 }
 0x17f   : > { %799 = vperm.xlu1 %1271, %v463_v62   ;;  %v867_v32 = vadd.f32 %v851_v30, %v767_v27 }
 0x180   : > { %v859_v31 = vadd.f32 %v843_v29, %v759_v28 }
 0x181   : > { %v1122_v34 = vmul.f32 -1.442695, %v867_v32  ;;  %v477_v36 = vpop.permute.xlu0 %476 }
 0x182   : > { %v1114_v33 = vmul.f32 -1.442695, %v859_v31  ;;  %v608_v35 = vpop.permute.xlu1 %607  ;;  %v558_v48 = vmul.f32 %v1512_v12, %v477_v36 }
 0x183   : > { %831 = vperm.xlu1 %1271, %v471_v0   ;;  %v650_v46 = vmul.f32 %v1509_v10, %v608_v35  ;;  %v240_v0 = vld [vmem:[%s1539_s17 + $0x8] sm:$0xff] }
 0x184   : > { %1273 = vpow2.f32 %v1114_v33 }
 0x185   : > { %1275 = vpow2.f32 %v1122_v34  ;;  %v517_v37 = vpop.permute.xlu0 %516 }
 0x186   : > { %v566_v41 = vmul.f32 %v1512_v12, %v517_v37 }
 0x187   : > { %v676_v38 = vpop.permute.xlu1 %675 }
 0x188   : > { %v666_v50 = vadd.f32 %v650_v46, %v566_v41  ;;  %v742_v56 = vmul.f32 %v1514_v13, %v676_v38  ;;  %v239_v46 = vld [vmem:[%s1539_s17] sm:$0xff] }
 0x18a   : > { %v576_v39 = vpop.permute.xlu0 %575 }
 0x18b   : > { %v642_v43 = vmul.f32 %v1509_v10, %v576_v39 }
 0x18c   : > { %v808_v40 = vpop.permute.xlu1 %807 }
 0x18d   : > { %v658_v53 = vadd.f32 %v642_v43, %v558_v48  ;;  %v850_v54 = vmul.f32 %v1519_v19, %v808_v40  ;;  %v247_v43 = vld [vmem:[%s1539_s17 + $0x40] sm:$0xff] }
 0x18e   : > { %v1274_v42 = vpop.eup %1273 }
 0x18f   : > { %v1276_v44 = vpop.eup %1275  ;;  %v923_v45 = vadd.f32 1.0, %v1274_v42  ;;  %v708_v49 = vpop.permute.xlu0 %707  ;;  %v758_v60 = vadd.f32 %v742_v56, %v658_v53 }
 0x190   : > { %v931_v47 = vadd.f32 1.0, %v1276_v44  ;;  %v750_v51 = vmul.f32 %v1514_v13, %v708_v49 }
 0x191   : > { %1277 = vrcp.f32 %v923_v45  ;;  %v492_v52 = vpop.permute.xlu1 %491 }
 0x192   : > { %1279 = vrcp.f32 %v931_v47  ;;  %v766_v55 = vadd.f32 %v750_v51, %v666_v50  ;;  %v561_v14 = vmul.f32 %v1512_v12, %v492_v52 }
 0x194   : > { %v866_v57 = vadd.f32 %v850_v54, %v766_v55  ;;  %v776_v58 = vpop.permute.xlu0 %775 }
 0x195   : > { %v532_v59 = vpop.permute.xlu1 %531  ;;  %v842_v61 = vmul.f32 %v1519_v19, %v776_v58 }
 0x196   : > { %v1121_v62 = vmul.f32 -1.442695, %v866_v57  ;;  %v569_v21 = vmul.f32 %v1512_v12, %v532_v59 }
 0x197   : > { %v858_v63 = vadd.f32 %v842_v61, %v758_v60 }
 0x198   : > { %1281 = vpow2.f32 %v1121_v62 }
 0x199   : > { %v1113_v2 = vmul.f32 -1.442695, %v858_v63  ;;  %v588_v3 = vpop.permute.xlu0 %587 }
 0x19a   : > { %v688_v4 = vpop.permute.xlu1 %687  ;;  %v645_v8 = vmul.f32 %v1509_v10, %v588_v3 }
 0x19b   : > { %v1278_v5 = vpop.eup %1277  ;;  %1283 = vpow2.f32 %v1113_v2  ;;  %v745_v22 = vmul.f32 %v1514_v13, %v688_v4 }
 0x19c   : > { %v1280_v6 = vpop.eup %1279  ;;  %v971_v7 = vmul.f32 %v1278_v5, %v240_v0  ;;  %v661_v18 = vadd.f32 %v645_v8, %v561_v14 }
 0x19d   : > { %v979_v9 = vmul.f32 %v1280_v6, %v248_v1  ;;  %v620_v15 = vpop.permute.xlu0 %619 }
 0x19e   : > { %v987_v11 = vadd.f32 %v971_v7, %v240_v0  ;;  %v720_v16 = vpop.permute.xlu1 %719  ;;  %v653_v20 = vmul.f32 %v1509_v10, %v620_v15  ;;  %v761_v27 = vadd.f32 %v745_v22, %v661_v18  ;;  %v242_v15 = vld [vmem:[%s1539_s17 + $0x18] sm:$0xff] }
 0x19f   : > { %v995_v17 = vadd.f32 %v979_v9, %v248_v1  ;;  %v753_v31 = vmul.f32 %v1514_v13, %v720_v16  ;;  %v250_v22 = vld [vmem:[%s1539_s17 + $0x58] sm:$0xff] }
 0x1a0   : > { %1003 = vst.msk [vmem:[%s1549_s20 + $0x8] sm:$0xff] %vm263_vm0, %v987_v11  ;;  %v669_v28 = vadd.f32 %v653_v20, %v569_v21 }
 0x1a1   : > { %1011 = vst.msk [vmem:[%s1549_s20 + $0x48] sm:$0xff] %vm263_vm0, %v995_v17 }
 0x1a2   : > { %v1282_v23 = vpop.eup %1281  ;;  %v788_v24 = vpop.permute.xlu0 %787  ;;  %v769_v35 = vadd.f32 %v753_v31, %v669_v28 }
 0x1a3   : > { %v487_v25 = vpop.permute.xlu1 %486  ;;  %v930_v26 = vadd.f32 1.0, %v1282_v23  ;;  %v845_v29 = vmul.f32 %v1519_v19, %v788_v24 }
 0x1a4   : > { %v560_v52 = vmul.f32 %v1512_v12, %v487_v25 }
 0x1a5   : > { %v1284_v30 = vpop.eup %1283  ;;  %1285 = vrcp.f32 %v930_v26  ;;  %v861_v32 = vadd.f32 %v845_v29, %v761_v27 }
 0x1a6   : > { %v922_v33 = vadd.f32 1.0, %v1284_v30  ;;  %v820_v34 = vpop.permute.xlu0 %819 }
 0x1a7   : > { %v1116_v36 = vmul.f32 -1.442695, %v861_v32  ;;  %v853_v37 = vmul.f32 %v1519_v19, %v820_v34 }
 0x1a8   : > { %v584_v38 = vpop.permute.xlu1 %583  ;;  %1287 = vrcp.f32 %v922_v33 }
 0x1a9   : > { %1289 = vpow2.f32 %v1116_v36  ;;  %v869_v39 = vadd.f32 %v853_v37, %v769_v35  ;;  %v644_v47 = vmul.f32 %v1509_v10, %v584_v38 }
 0x1ab   : > { %v1124_v40 = vmul.f32 -1.442695, %v869_v39  ;;  %v527_v41 = vpop.permute.xlu0 %526  ;;  %v660_v57 = vadd.f32 %v644_v47, %v560_v52 }
 0x1ac   : > { %v616_v42 = vpop.permute.xlu1 %615  ;;  %v568_v58 = vmul.f32 %v1512_v12, %v527_v41 }
 0x1ad   : > { %1291 = vpow2.f32 %v1124_v40  ;;  %v652_v59 = vmul.f32 %v1509_v10, %v616_v42 }
 0x1af   : > { %v1286_v44 = vpop.eup %1285  ;;  %v668_v4 = vadd.f32 %v652_v59, %v568_v58 }
 0x1b0   : > { %v978_v45 = vmul.f32 %v1286_v44, %v247_v43  ;;  %v716_v49 = vpop.permute.xlu0 %715 }
 0x1b1   : > { %v684_v48 = vpop.permute.xlu1 %683  ;;  %v752_v63 = vmul.f32 %v1514_v13, %v716_v49 }
 0x1b2   : > { %v1288_v50 = vpop.eup %1287  ;;  %v994_v51 = vadd.f32 %v978_v45, %v247_v43  ;;  %v744_v53 = vmul.f32 %v1514_v13, %v684_v48 }
 0x1b3   : > { %v1290_v54 = vpop.eup %1289  ;;  %v970_v55 = vmul.f32 %v1288_v50, %v239_v46  ;;  %v768_v8 = vadd.f32 %v752_v63, %v668_v4 }
 0x1b4   : > { %1010 = vst.msk [vmem:[%s1549_s20 + $0x40] sm:$0xff] %vm263_vm0, %v994_v51  ;;  %v925_v56 = vadd.f32 1.0, %v1290_v54  ;;  %v760_v0 = vadd.f32 %v744_v53, %v660_v57  ;;  %v241_v54 = vld [vmem:[%s1539_s17 + $0x10] sm:$0xff] }
 0x1b5   : > { %v986_v60 = vadd.f32 %v970_v55, %v239_v46  ;;  %v596_v62 = vpop.permute.xlu0 %595 }
 0x1b6   : > { %v784_v61 = vpop.permute.xlu1 %783  ;;  %1293 = vrcp.f32 %v925_v56  ;;  %v647_v27 = vmul.f32 %v1509_v10, %v596_v62 }
 0x1b7   : > { %v844_v1 = vmul.f32 %v1519_v19, %v784_v61  ;;  %v1292_v2 = vpop.eup %1291  ;;  %1002 = vst.msk [vmem:[%s1549_s20] sm:$0xff] %vm263_vm0, %v986_v60  ;;  %v249_v61 = vld [vmem:[%s1539_s17 + $0x50] sm:$0xff] }
 0x1b8   : > { %v933_v3 = vadd.f32 1.0, %v1292_v2 }
 0x1b9   : > { %v860_v5 = vadd.f32 %v844_v1, %v760_v0  ;;  %v628_v7 = vpop.permute.xlu0 %627 }
 0x1ba   : > { %v816_v6 = vpop.permute.xlu1 %815  ;;  %1295 = vrcp.f32 %v933_v3  ;;  %v655_v39 = vmul.f32 %v1509_v10, %v628_v7 }
 0x1bb   : > { %v1115_v9 = vmul.f32 -1.442695, %v860_v5  ;;  %v852_v11 = vmul.f32 %v1519_v19, %v816_v6 }
 0x1bd   : > { %1297 = vpow2.f32 %v1115_v9  ;;  %v868_v14 = vadd.f32 %v852_v11, %v768_v8 }
 0x1be   : > { %v796_v17 = vpop.permute.xlu0 %795 }
 0x1bf   : > { %v1123_v16 = vmul.f32 -1.442695, %v868_v14  ;;  %v502_v18 = vpop.permute.xlu1 %501  ;;  %v847_v40 = vmul.f32 %v1519_v19, %v796_v17 }
 0x1c0   : > { %v1294_v20 = vpop.eup %1293  ;;  %v563_v28 = vmul.f32 %v1512_v12, %v502_v18 }
 0x1c1   : > { %1299 = vpow2.f32 %v1123_v16  ;;  %v973_v21 = vmul.f32 %v1294_v20, %v242_v15 }
 0x1c2   : > { %v828_v23 = vpop.permute.xlu0 %827  ;;  %v663_v35 = vadd.f32 %v647_v27, %v563_v28 }
 0x1c3   : > { %v542_v24 = vpop.permute.xlu1 %541  ;;  %v989_v25 = vadd.f32 %v973_v21, %v242_v15  ;;  %v855_v48 = vmul.f32 %v1519_v19, %v828_v23 }
 0x1c4   : > { %v1296_v26 = vpop.eup %1295  ;;  %v571_v36 = vmul.f32 %v1512_v12, %v542_v24 }
 0x1c5   : > { %1005 = vst.msk [vmem:[%s1549_s20 + $0x18] sm:$0xff] %vm263_vm0, %v989_v25  ;;  %v981_v29 = vmul.f32 %v1296_v26, %v250_v22 }
 0x1c6   : > { %v671_v45 = vadd.f32 %v655_v39, %v571_v36 }
 0x1c7   : > { %v1298_v30 = vpop.eup %1297  ;;  %v997_v31 = vadd.f32 %v981_v29, %v250_v22  ;;  %v497_v34 = vpop.permute.xlu0 %496 }
 0x1c8   : > { %v924_v32 = vadd.f32 1.0, %v1298_v30  ;;  %v696_v33 = vpop.permute.xlu1 %695  ;;  %v562_v59 = vmul.f32 %v1512_v12, %v497_v34 }
 0x1c9   : > { %v747_v37 = vmul.f32 %v1514_v13, %v696_v33  ;;  %1013 = vst.msk [vmem:[%s1549_s20 + $0x58] sm:$0xff] %vm263_vm0, %v997_v31  ;;  %v244_v31 = vld [vmem:[%s1539_s17 + $0x28] sm:$0xff] }
 0x1ca   : > { %1301 = vrcp.f32 %v924_v32 }
 0x1cb   : > { %v1300_v38 = vpop.eup %1299  ;;  %v763_v41 = vadd.f32 %v747_v37, %v663_v35  ;;  %v537_v44 = vpop.permute.xlu0 %536 }
 0x1cc   : > { %v932_v42 = vadd.f32 1.0, %v1300_v38  ;;  %v728_v43 = vpop.permute.xlu1 %727  ;;  %v570_v4 = vmul.f32 %v1512_v12, %v537_v44  ;;  %v252_v38 = vld [vmem:[%s1539_s17 + $0x68] sm:$0xff] }
 0x1cd   : > { %v863_v46 = vadd.f32 %v847_v40, %v763_v41  ;;  %v755_v47 = vmul.f32 %v1514_v13, %v728_v43 }
 0x1ce   : > { %1303 = vrcp.f32 %v932_v42 }
 0x1cf   : > { %v1118_v49 = vmul.f32 -1.442695, %v863_v46  ;;  %v771_v50 = vadd.f32 %v755_v47, %v671_v45 }
 0x1d0   : > { %v692_v53 = vpop.permute.xlu0 %691 }
 0x1d1   : > { %1305 = vpow2.f32 %v1118_v49  ;;  %v871_v51 = vadd.f32 %v855_v48, %v771_v50  ;;  %v592_v52 = vpop.permute.xlu1 %591  ;;  %v746_v5 = vmul.f32 %v1514_v13, %v692_v53 }
 0x1d2   : > { %v646_v56 = vmul.f32 %v1509_v10, %v592_v52 }
 0x1d3   : > { %v1126_v55 = vmul.f32 -1.442695, %v871_v51 }
 0x1d4   : > { %v1302_v57 = vpop.eup %1301  ;;  %v724_v62 = vpop.permute.xlu0 %723  ;;  %v662_v0 = vadd.f32 %v646_v56, %v562_v59 }
 0x1d5   : > { %v972_v58 = vmul.f32 %v1302_v57, %v241_v54  ;;  %1307 = vpow2.f32 %v1126_v55  ;;  %v624_v60 = vpop.permute.xlu1 %623  ;;  %v754_v17 = vmul.f32 %v1514_v13, %v724_v62 }
 0x1d6   : > { %v654_v1 = vmul.f32 %v1509_v10, %v624_v60  ;;  %v762_v11 = vadd.f32 %v746_v5, %v662_v0  ;;  %v243_v60 = vld [vmem:[%s1539_s17 + $0x20] sm:$0xff] }
 0x1d7   : > { %v988_v63 = vadd.f32 %v972_v58, %v241_v54  ;;  %v251_v5 = vld [vmem:[%s1539_s17 + $0x60] sm:$0xff] }
 0x1d8   : > { %v1304_v2 = vpop.eup %1303  ;;  %v670_v14 = vadd.f32 %v654_v1, %v570_v4 }
 0x1d9   : > { %1004 = vst.msk [vmem:[%s1549_s20 + $0x10] sm:$0xff] %vm263_vm0, %v988_v63  ;;  %v980_v3 = vmul.f32 %v1304_v2, %v249_v61  ;;  %v604_v7 = vpop.permute.xlu0 %603 }
 0x1da   : > { %v792_v6 = vpop.permute.xlu1 %791  ;;  %v770_v23 = vadd.f32 %v754_v17, %v670_v14  ;;  %v649_v36 = vmul.f32 %v1509_v10, %v604_v7 }
 0x1db   : > { %v1306_v8 = vpop.eup %1305  ;;  %v996_v9 = vadd.f32 %v980_v3, %v249_v61  ;;  %v846_v15 = vmul.f32 %v1519_v19, %v792_v6 }
 0x1dc   : > { %v927_v16 = vadd.f32 1.0, %v1306_v8 }
 0x1dd   : > { %1012 = vst.msk [vmem:[%s1549_s20 + $0x50] sm:$0xff] %vm263_vm0, %v996_v9  ;;  %v862_v18 = vadd.f32 %v846_v15, %v762_v11  ;;  %v636_v21 = vpop.permute.xlu0 %635 }
 0x1de   : > { %1309 = vrcp.f32 %v927_v16  ;;  %v824_v20 = vpop.permute.xlu1 %823  ;;  %v657_v62 = vmul.f32 %v1509_v10, %v636_v21 }
 0x1df   : > { %v1308_v22 = vpop.eup %1307  ;;  %v1117_v24 = vmul.f32 -1.442695, %v862_v18  ;;  %v854_v25 = vmul.f32 %v1519_v19, %v824_v20 }
 0x1e0   : > { %v935_v26 = vadd.f32 1.0, %v1308_v22 }
 0x1e1   : > { %1311 = vpow2.f32 %v1117_v24  ;;  %v870_v27 = vadd.f32 %v854_v25, %v770_v23 }
 0x1e2   : > { %1313 = vrcp.f32 %v935_v26  ;;  %v804_v29 = vpop.permute.xlu0 %803 }
 0x1e3   : > { %v1125_v28 = vmul.f32 -1.442695, %v870_v27  ;;  %v512_v30 = vpop.permute.xlu1 %511  ;;  %v849_v50 = vmul.f32 %v1519_v19, %v804_v29 }
 0x1e4   : > { %v565_v37 = vmul.f32 %v1512_v12, %v512_v30 }
 0x1e5   : > { %1315 = vpow2.f32 %v1125_v28 }
 0x1e6   : > { %v665_v46 = vadd.f32 %v649_v36, %v565_v37 }
 0x1e7   : > { %v552_v32 = vpop.permute.xlu1 %551  ;;  %v507_v34 = vpop.permute.xlu0 %506 }
 0x1e8   : > { %v1310_v33 = vpop.eup %1309  ;;  %v573_v57 = vmul.f32 %v1512_v12, %v552_v32  ;;  %v564_v1 = vmul.f32 %v1512_v12, %v507_v34 }
 0x1e9   : > { %v975_v35 = vmul.f32 %v1310_v33, %v244_v31 }
 0x1ea   : > { %v673_v3 = vadd.f32 %v657_v62, %v573_v57 }
 0x1eb   : > { %v1312_v39 = vpop.eup %1311  ;;  %v991_v40 = vadd.f32 %v975_v35, %v244_v31  ;;  %v547_v44 = vpop.permute.xlu0 %546  ;;  %v246_v35 = vld [vmem:[%s1539_s17 + $0x38] sm:$0xff] }
 0x1ec   : > { %v1314_v41 = vpop.eup %1313  ;;  %v926_v42 = vadd.f32 1.0, %v1312_v39  ;;  %v704_v43 = vpop.permute.xlu1 %703  ;;  %v572_v18 = vmul.f32 %v1512_v12, %v547_v44 }
 0x1ed   : > { %1007 = vst.msk [vmem:[%s1549_s20 + $0x28] sm:$0xff] %vm263_vm0, %v991_v40  ;;  %v983_v45 = vmul.f32 %v1314_v41, %v252_v38  ;;  %v749_v47 = vmul.f32 %v1514_v13, %v704_v43  ;;  %v254_v43 = vld [vmem:[%s1539_s17 + $0x78] sm:$0xff] }
 0x1ee   : > { %1317 = vrcp.f32 %v926_v42 }
 0x1ef   : > { %v1316_v48 = vpop.eup %1315  ;;  %v999_v49 = vadd.f32 %v983_v45, %v252_v38  ;;  %v765_v51 = vadd.f32 %v749_v47, %v665_v46  ;;  %v245_v46 = vld [vmem:[%s1539_s17 + $0x30] sm:$0xff] }
 0x1f0   : > { %v934_v52 = vadd.f32 1.0, %v1316_v48  ;;  %v736_v53 = vpop.permute.xlu1 %735  ;;  %v700_v55 = vpop.permute.xlu0 %699 }
 0x1f1   : > { %1015 = vst.msk [vmem:[%s1549_s20 + $0x68] sm:$0xff] %vm263_vm0, %v999_v49  ;;  %v865_v54 = vadd.f32 %v849_v50, %v765_v51  ;;  %v757_v63 = vmul.f32 %v1514_v13, %v736_v53  ;;  %v748_v16 = vmul.f32 %v1514_v13, %v700_v55  ;;  %v253_v50 = vld [vmem:[%s1539_s17 + $0x70] sm:$0xff] }
 0x1f2   : > { %1319 = vrcp.f32 %v934_v52 }
 0x1f3   : > { %v1120_v56 = vmul.f32 -1.442695, %v865_v54  ;;  %v773_v9 = vadd.f32 %v757_v63, %v673_v3 }
 0x1f4   : > { %v732_v59 = vpop.permute.xlu0 %731 }
 0x1f5   : > { %1321 = vpow2.f32 %v1120_v56  ;;  %v600_v58 = vpop.permute.xlu1 %599  ;;  %v756_v28 = vmul.f32 %v1514_v13, %v732_v59 }
 0x1f6   : > { %v648_v61 = vmul.f32 %v1509_v10, %v600_v58 }
 0x1f8   : > { %v1318_v0 = vpop.eup %1317  ;;  %v664_v6 = vadd.f32 %v648_v61, %v564_v1 }
 0x1f9   : > { %v974_v2 = vmul.f32 %v1318_v0, %v243_v60  ;;  %v632_v4 = vpop.permute.xlu1 %631  ;;  %v836_v7 = vpop.permute.xlu0 %835 }
 0x1fa   : > { %v656_v11 = vmul.f32 %v1509_v10, %v632_v4  ;;  %v857_v14 = vmul.f32 %v1519_v19, %v836_v7  ;;  %v764_v22 = vadd.f32 %v748_v16, %v664_v6 }
 0x1fb   : > { %v990_v8 = vadd.f32 %v974_v2, %v243_v60 }
 0x1fc   : > { %v1320_v15 = vpop.eup %1319  ;;  %v873_v20 = vadd.f32 %v857_v14, %v773_v9  ;;  %v672_v25 = vadd.f32 %v656_v11, %v572_v18 }
 0x1fd   : > { %1006 = vst.msk [vmem:[%s1549_s20 + $0x20] sm:$0xff] %vm263_vm0, %v990_v8  ;;  %v982_v17 = vmul.f32 %v1320_v15, %v251_v5 }
 0x1fe   : > { %v800_v21 = vpop.permute.xlu1 %799  ;;  %v1128_v26 = vmul.f32 -1.442695, %v873_v20  ;;  %v772_v31 = vadd.f32 %v756_v28, %v672_v25 }
 0x1ff   : > { %v1322_v23 = vpop.eup %1321  ;;  %v998_v24 = vadd.f32 %v982_v17, %v251_v5  ;;  %v848_v10 = vmul.f32 %v1519_v19, %v800_v21 }
 0x200   : > { %v929_v27 = vadd.f32 1.0, %v1322_v23  ;;  %1323 = vpow2.f32 %v1128_v26 }
 0x201   : > { %1014 = vst.msk [vmem:[%s1549_s20 + $0x60] sm:$0xff] %vm263_vm0, %v998_v24  ;;  %v864_v29 = vadd.f32 %v848_v10, %v764_v22 }
 0x202   : > { %1325 = vrcp.f32 %v929_v27  ;;  %v832_v30 = vpop.permute.xlu1 %831 }
 0x203   : > { %v1119_v12 = vmul.f32 -1.442695, %v864_v29  ;;  %v856_v32 = vmul.f32 %v1519_v19, %v832_v30 }
 0x205   : > { %1327 = vpow2.f32 %v1119_v12  ;;  %v872_v33 = vadd.f32 %v856_v32, %v772_v31 }
 0x207   : > { %v1127_v34 = vmul.f32 -1.442695, %v872_v33 }
 0x209   : > { %1329 = vpow2.f32 %v1127_v34 }
 0x20a   : > { %v1324_v36 = vpop.eup %1323 }
 0x20b   : > { %v937_v38 = vadd.f32 1.0, %v1324_v36 }
 0x20c   : > { %v1326_v37 = vpop.eup %1325 }
 0x20d   : > { %v977_v13 = vmul.f32 %v1326_v37, %v246_v35  ;;  %1331 = vrcp.f32 %v937_v38 }
 0x20f   : > { %v1328_v39 = vpop.eup %1327  ;;  %v993_v40 = vadd.f32 %v977_v13, %v246_v35 }
 0x210   : > { %v928_v41 = vadd.f32 1.0, %v1328_v39 }
 0x211   : > { %1009 = vst.msk [vmem:[%s1549_s20 + $0x38] sm:$0xff] %vm263_vm0, %v993_v40 }
 0x212   : > { %1333 = vrcp.f32 %v928_v41 }
 0x213   : > { %v1330_v19 = vpop.eup %1329 }
 0x214   : > { %v936_v42 = vadd.f32 1.0, %v1330_v19 }
 0x216   : > { %1335 = vrcp.f32 %v936_v42 }
 0x217   : > { %v1332_v44 = vpop.eup %1331 }
 0x218   : > { %v985_v45 = vmul.f32 %v1332_v44, %v254_v43 }
 0x21a   : > { %v1001_v47 = vadd.f32 %v985_v45, %v254_v43 }
 0x21c   : > { %v1334_v48 = vpop.eup %1333  ;;  %1017 = vst.msk [vmem:[%s1549_s20 + $0x78] sm:$0xff] %vm263_vm0, %v1001_v47 }
 0x21d   : > { %v976_v49 = vmul.f32 %v1334_v48, %v245_v46 }
 0x21f   : > { %v992_v51 = vadd.f32 %v976_v49, %v245_v46 }
 0x220   : > { %v1336_v52 = vpop.eup %1335 }
 0x221   : > { %1008 = vst.msk [vmem:[%s1549_s20 + $0x30] sm:$0xff] %vm263_vm0, %v992_v51  ;;  %v984_v53 = vmul.f32 %v1336_v52, %v253_v50 }
 0x223   : > { %v1000_v54 = vadd.f32 %v984_v53, %v253_v50 }
 0x225   : > { %1016 = vst.msk [vmem:[%s1549_s20 + $0x70] sm:$0xff] %vm263_vm0, %v1000_v54 }
 0x226 PF: > { %s14_s15 = sadd.s32 1, %s1343_s15  }
 0x227   : > { %p11_p4 = scmp.ge.s32.totalorder %s14_s15, 6  }
 0x229   :  { %13 = sbr.rel (!%p11_p4) target bundleno = 1 (0x1), region = 69 }

</bundles_post_ra>
